<compile_context>
chip_gen: v6e
topology: v6e:2x2x1
jax: 0.10.0
libtpu: 0.0.40
codegen_flags: <defaults>
</compile_context>

<pallas_src>
import functools

import jax
import jax.numpy as jnp
from jax.experimental import pallas as pl
from jax.experimental.pallas import tpu as pltpu


def _softmax_class0(x, num_classes, num_slices):
    """Class-0 softmax probability from lane-flattened logits.

    x: (TB, num_classes * num_slices) f32, class bands contiguous along lanes.
    Returns (TB, num_slices) f32.
    """
    x0 = x[:, :num_slices]
    if num_classes == 2:
        # softmax(x)[0] == sigmoid(x0 - x1); stable tanh form, single EUP op.
        return 0.5 * (jnp.tanh(0.5 * (x0 - x[:, num_slices:2 * num_slices])) + 1.0)
    # General C: numerically-stable softmax over static class bands, exact divide.
    bands = [x[:, c * num_slices:(c + 1) * num_slices] for c in range(num_classes)]
    m = bands[0]
    for b in bands[1:]:
        m = jnp.maximum(m, b)
    total = jnp.zeros_like(x0)
    for b in bands:
        total = total + jnp.exp(b - m)
    return jnp.exp(x0 - m) / total


def _slice_attention_kernel(ind_ref, pred_ref, feat_ref, out_ref,
                            *, num_slices, c_ind, c_pred):
    """Fused slice-attention forward for one batch tile.

    ind_ref:  (TB, c_ind  * S)  indicator-head logits (lane-flattened class x slice)
    pred_ref: (TB, c_pred * S)  predictor-head logits
    feat_ref: (TB, S, F)        per-slice representations (native dtype)
    out_ref:  (TB, F)           attention-reweighted representation
    """
    ind_p0 = _softmax_class0(ind_ref[...].astype(jnp.float32), c_ind, num_slices)
    pred_p0 = _softmax_class0(pred_ref[...].astype(jnp.float32), c_pred, num_slices)

    # Attention over slices: softmax(ind_p0 * pred_p0, axis=-1).
    scores = ind_p0 * pred_p0                                          # (TB, S)
    s_max = jnp.max(scores, axis=-1, keepdims=True)
    s_exp = jnp.exp(scores - s_max)
    denom = jnp.sum(s_exp, axis=-1, keepdims=True)
    attn = s_exp * pl.reciprocal(denom, approx=True)                   # (TB, S)

    # Reweighted representation: VPU broadcast-multiply + reduce over the slice axis.
    feats = feat_ref[...].astype(jnp.float32)                          # (TB, S, F)
    out = jnp.sum(attn[:, :, None] * feats, axis=1)                    # (TB, F)
    out_ref[...] = out.astype(out_ref.dtype)


def slice_attention(ind_logits, pred_logits, feats, *, batch_block=None):
    """Fused slice-attention forward.

    Args:
      ind_logits:  (B, C_ind, S)  stacked per-slice indicator-head logits.
      pred_logits: (B, C_pred, S) stacked per-slice predictor-head logits.
      feats:       (B, S, F)      stacked per-slice representations.
      batch_block: batch tile per grid step; must divide B and be a multiple of 8
                   (or equal B). None -> single grid step over the whole batch
                   (recommended on v5e/v6e). On v7x pass B//2 for a 2-TC split.

    Returns:
      (B, F) attention-reweighted representation in feats' dtype.
    """
    B, c_ind, S = ind_logits.shape
    _, c_pred, _ = pred_logits.shape
    _, _, F = feats.shape
    assert pred_logits.shape[0] == B and pred_logits.shape[2] == S
    assert feats.shape[:2] == (B, S)

    # Lane-flatten the class/slice axes. Contiguous reshape: free metadata op, no HBM pass.
    ind_flat = ind_logits.reshape(B, c_ind * S)
    pred_flat = pred_logits.reshape(B, c_pred * S)

    tb = B if batch_block is None else batch_block
    assert B % tb == 0, "batch_block must divide the batch size"
    assert tb == B or tb % 8 == 0, (
        "batch_block must be a multiple of 8 (sublane tiling of blocked dims) or equal B"
    )
    grid = (B // tb,)

    itemsize_logits = jnp.dtype(ind_logits.dtype).itemsize
    itemsize_feats = jnp.dtype(feats.dtype).itemsize
    cost = pl.CostEstimate(
        flops=2 * B * S * F,                                   # weighted sum (mul + add)
        transcendentals=3 * B * S,                             # 2 sigmoids + attention exp
        bytes_accessed=(ind_flat.size + pred_flat.size) * itemsize_logits
        + feats.size * itemsize_feats
        + B * F * itemsize_feats,
    )

    kernel = functools.partial(
        _slice_attention_kernel, num_slices=S, c_ind=c_ind, c_pred=c_pred)

    return pl.pallas_call(
        kernel,
        out_shape=jax.ShapeDtypeStruct((B, F), feats.dtype),
        grid_spec=pltpu.PrefetchScalarGridSpec(
            num_scalar_prefetch=0,
            grid=grid,
            in_specs=[
                pl.BlockSpec((tb, c_ind * S), lambda i: (i, 0)),
                pl.BlockSpec((tb, c_pred * S), lambda i: (i, 0)),
                pl.BlockSpec((tb, S, F), lambda i: (i, 0, 0)),
            ],
            out_specs=pl.BlockSpec((tb, F), lambda i: (i, 0)),
        ),
        compiler_params=pltpu.CompilerParams(
            # Independent batch tiles: lets Mosaic shard grid steps across v7x's 2 TCs
            # when batch_block=B//2; a no-op on single-TC v5e/v6e (grid=(1,)).
            dimension_semantics=("parallel",),
        ),
        cost_estimate=cost,
    )(ind_flat, pred_flat, feats)


def slice_attention_ref(ind_logits, pred_logits, feats):
    """Pure-JAX reference mirroring the PyTorch module (for verification)."""
    ind_p0 = jax.nn.softmax(ind_logits, axis=1)[:, 0, :]      # (B, S)
    pred_p0 = jax.nn.softmax(pred_logits, axis=1)[:, 0, :]    # (B, S)
    A = jax.nn.softmax(ind_p0 * pred_p0, axis=1)              # (B, S)
    return jnp.sum(A[:, :, None] * feats, axis=1)             # (B, F)


if __name__ == "__main__":
    key = jax.random.PRNGKey(0)
    B, S, C, F = 16, 4, 2, 32

    k1, k2, k3 = jax.random.split(key, 3)
    # Per-slice head outputs, stacked into the documented wrapper layout.
    ind_logits = jax.random.normal(k1, (B, C, S), dtype=jnp.float32)
    pred_logits = jax.random.normal(k2, (B, C, S), dtype=jnp.float32)
    feats = jax.random.normal(k3, (B, S, F), dtype=jnp.float32)

    # Default grid=(1,): single step over the whole batch (best on single-TC chips).
    out = jax.block_until_ready(slice_attention(ind_logits, pred_logits, feats))
    ref = slice_attention_ref(ind_logits, pred_logits, feats)

    assert out.shape == (B, F)
    # Only the attention denominator uses the EUP approximate reciprocal (~1e-4 rel err);
    # everything else is exact, so a tight tolerance holds.
    assert jnp.allclose(out, ref, atol=2e-3, rtol=2e-3), "mismatch vs reference"
    print("KERNEL_OK")
</pallas_src>

<mosaic_0001>
module attributes {stable_mosaic.version = 11 : i64} {
  func.func @_slice_attention_kernel(%arg0: i32, %arg1: memref<16x8xf32, #tpu.memory_space<vmem>>, %arg2: memref<16x8xf32, #tpu.memory_space<vmem>>, %arg3: memref<16x4x32xf32, #tpu.memory_space<vmem>>, %arg4: memref<16x32xf32, #tpu.memory_space<vmem>>) attributes {dimension_semantics = [#tpu.dimension_semantics<parallel>], iteration_bounds = array<i64: 1>, scalar_prefetch = 0 : i64, scratch_operands = 0 : i64, tpu.core_type = #tpu.core_type<tc>, window_params = [{transform_indices = @transform_0, window_bounds = array<i64: 16, 8>}, {transform_indices = @transform_1, window_bounds = array<i64: 16, 8>}, {transform_indices = @transform_2, window_bounds = array<i64: 16, 4, 32>}, {transform_indices = @transform_3, window_bounds = array<i64: 16, 32>}]} {
    %c0 = arith.constant 0 : index
    %c0_0 = arith.constant 0 : index
    %0 = vector.load %arg1[%c0, %c0_0] : memref<16x8xf32, #tpu.memory_space<vmem>>, vector<16x8xf32>
    %1 = vector.extract_strided_slice %0 {offsets = [0, 0], sizes = [16, 4], strides = [1, 1]} : vector<16x8xf32> to vector<16x4xf32>
    %2 = vector.extract_strided_slice %0 {offsets = [0, 4], sizes = [16, 4], strides = [1, 1]} : vector<16x8xf32> to vector<16x4xf32>
    %3 = arith.subf %1, %2 : vector<16x4xf32>
    %cst = arith.constant 5.000000e-01 : f32
    %4 = vector.broadcast %cst : f32 to vector<16x4xf32>
    %5 = arith.mulf %4, %3 : vector<16x4xf32>
    %6 = math.tanh %5 : vector<16x4xf32>
    %cst_1 = arith.constant 1.000000e+00 : f32
    %7 = vector.broadcast %cst_1 : f32 to vector<16x4xf32>
    %8 = arith.addf %6, %7 : vector<16x4xf32>
    %cst_2 = arith.constant 5.000000e-01 : f32
    %9 = vector.broadcast %cst_2 : f32 to vector<16x4xf32>
    %10 = arith.mulf %9, %8 : vector<16x4xf32>
    %c0_3 = arith.constant 0 : index
    %c0_4 = arith.constant 0 : index
    %11 = vector.load %arg2[%c0_3, %c0_4] : memref<16x8xf32, #tpu.memory_space<vmem>>, vector<16x8xf32>
    %12 = vector.extract_strided_slice %11 {offsets = [0, 0], sizes = [16, 4], strides = [1, 1]} : vector<16x8xf32> to vector<16x4xf32>
    %13 = vector.extract_strided_slice %11 {offsets = [0, 4], sizes = [16, 4], strides = [1, 1]} : vector<16x8xf32> to vector<16x4xf32>
    %14 = arith.subf %12, %13 : vector<16x4xf32>
    %cst_5 = arith.constant 5.000000e-01 : f32
    %15 = vector.broadcast %cst_5 : f32 to vector<16x4xf32>
    %16 = arith.mulf %15, %14 : vector<16x4xf32>
    %17 = math.tanh %16 : vector<16x4xf32>
    %cst_6 = arith.constant 1.000000e+00 : f32
    %18 = vector.broadcast %cst_6 : f32 to vector<16x4xf32>
    %19 = arith.addf %17, %18 : vector<16x4xf32>
    %cst_7 = arith.constant 5.000000e-01 : f32
    %20 = vector.broadcast %cst_7 : f32 to vector<16x4xf32>
    %21 = arith.mulf %20, %19 : vector<16x4xf32>
    %22 = arith.mulf %10, %21 : vector<16x4xf32>
    %cst_8 = arith.constant dense<0xFF800000> : vector<16xf32>
    %23 = vector.multi_reduction <maximumf>, %22, %cst_8 [1] : vector<16x4xf32> to vector<16xf32>
    %24 = vector.shape_cast %23 : vector<16xf32> to vector<16x1xf32>
    %25 = vector.broadcast %24 : vector<16x1xf32> to vector<16x4xf32>
    %26 = arith.subf %22, %25 : vector<16x4xf32>
    %27 = math.exp %26 : vector<16x4xf32>
    %cst_9 = arith.constant dense<0.000000e+00> : vector<16xf32>
    %28 = vector.multi_reduction <add>, %27, %cst_9 [1] : vector<16x4xf32> to vector<16xf32>
    %29 = vector.shape_cast %28 : vector<16xf32> to vector<16x1xf32>
    %30 = tpu.reciprocal %29 {approx = true} : vector<16x1xf32> -> vector<16x1xf32>
    %31 = vector.broadcast %30 : vector<16x1xf32> to vector<16x4xf32>
    %32 = arith.mulf %27, %31 : vector<16x4xf32>
    %c0_10 = arith.constant 0 : index
    %c0_11 = arith.constant 0 : index
    %c0_12 = arith.constant 0 : index
    %33 = vector.load %arg3[%c0_10, %c0_11, %c0_12] : memref<16x4x32xf32, #tpu.memory_space<vmem>>, vector<16x4x32xf32>
    %34 = vector.shape_cast %32 : vector<16x4xf32> to vector<16x4x1xf32>
    %35 = vector.broadcast %34 : vector<16x4x1xf32> to vector<16x4x32xf32>
    %36 = arith.mulf %35, %33 : vector<16x4x32xf32>
    %cst_13 = arith.constant dense<0.000000e+00> : vector<16x32xf32>
    %37 = vector.multi_reduction <add>, %36, %cst_13 [1] : vector<16x4x32xf32> to vector<16x32xf32>
    %c0_14 = arith.constant 0 : index
    %c0_15 = arith.constant 0 : index
    %38 = vector.load %arg4[%c0_14, %c0_15] : memref<16x32xf32, #tpu.memory_space<vmem>>, vector<16x32xf32>
    tpu.vector_store %arg4[%c0_14, %c0_15], %37 {strides = array<i32>} : memref<16x32xf32, #tpu.memory_space<vmem>>, vector<16x32xf32>,
    return
  }
  func.func @transform_0(%arg0: i32) -> (i32, i32) {
    %c0_i32 = arith.constant 0 : i32
    %c0_i32_0 = arith.constant 0 : i32
    return %arg0, %c0_i32 : i32, i32
  }
  func.func @transform_1(%arg0: i32) -> (i32, i32) {
    %c0_i32 = arith.constant 0 : i32
    %c0_i32_0 = arith.constant 0 : i32
    return %arg0, %c0_i32 : i32, i32
  }
  func.func @transform_2(%arg0: i32) -> (i32, i32, i32) {
    %c0_i32 = arith.constant 0 : i32
    %c0_i32_0 = arith.constant 0 : i32
    %c0_i32_1 = arith.constant 0 : i32
    return %arg0, %c0_i32, %c0_i32_0 : i32, i32, i32
  }
  func.func @transform_3(%arg0: i32) -> (i32, i32) {
    %c0_i32 = arith.constant 0 : i32
    %c0_i32_0 = arith.constant 0 : i32
    return %arg0, %c0_i32 : i32, i32
  }
}

</mosaic_0001>

<bundles_post_ra>
// kernel: tpu_custom_call.1
= control target key start
LH: loop header
LB: loop body
LE: loop exit
PB: predicated region body
PF: predicated region fallthrough
CT: control target
= control target key end

     0   :  { %8 = vsyncpa [#allocation3], 0  ;;  %s564_s0 = inlined_call_operand.vmem [shape: f32[16,8], index: 0, kind: input, shape index: {}]   ;;  %s565_s1 = inlined_call_operand.vmem [shape: f32[16,8], index: 1, kind: input, shape index: {}]   ;;  %s566_s2 = inlined_call_operand.hbm [shape: f32[16,4,32], index: 2, kind: input, shape index: {}]   ;;  %s567_s3 = inlined_call_operand.hbm [shape: f32[16,32], index: 3, kind: output, shape index: {}]  }
   0x1   :  { %9 = vsyncpa [#allocation4], 0  ;;  %s477_s12 = smov [#allocation2]  }
   0x2   :  { %s19_s13 = sshll.u32 %s477_s12, 4  ;;  %s20_s13 = int_to_ptr.vmem [resolvable:$true] %s19_s13 }
   0x3   :  { %s441_s14 = scalar_lea.vmem %s20_s13, 1024  ;;  %p446_p1 = scmp.lt.s32.totalorder %s20_s13, %s20_s13 }
   0x4   :  { %p442_p0 = scmp.ne.s32.totalorder %s20_s13, %s441_s14  ;;  %p447_p2 = scmp.lt.s32.totalorder %s441_s14, %s441_s14 }
   0x6   :  { %p448_p3 = por %p447_p2, %p446_p1 }
   0x8   :  { %p449_p4 = pnand %p448_p3, %p442_p0 }
   0xa   :  { %452 = shalt.err (!%p449_p4)
}
   0xb   :  { %s478_s15 = smov 64   ;;  %s479_s16 = smov 4  }
   0xc   :  { %25 = dma.hbm_to_vmem [thread:$0]  %s566_s2, 1024, %s20_s13, [#allocation3], %s478_s15, %s478_s15, %s479_s16  }
   0xd   :  { %473 = dma.done.wait [#allocation3], 1024  }
   0xe   :  { %474 = vsyncadd [#allocation3], 4294966272  ;;  %v49_v0 = vld [vmem:[%s565_s1] sm:$0xff]  ;;  %s480_s23 = smov 124   ;;  %v50_v2 = vld [vmem:[%s565_s1 + $0x8] sm:$0xff]  ;;  %vm71_vm0 = vcmask 31744   ;;  %v110_v44 = vlaneseq }
   0xf   :  { %v29_v1 = vld [vmem:[%s564_s0] sm:$0xff]  ;;  %53 = vrot.lane.b32.xlu1 %v49_v0, %s480_s23  ;;  %v30_v3 = vld [vmem:[%s564_s0 + $0x8] sm:$0xff]  ;;  %vm238_vm1 = vcmask 257024   ;;  %vm367_vm2 = vcmask 1041409   ;;  %vm369_vm3 = vcmask 1042434   ;;  %vm371_vm4 = vcmask 1043459  }
  0x10   :  { %33 = vrot.lane.b32.xlu0 %v29_v1, %s480_s23  ;;  %v111_v45 = vshrl.u32 %v110_v44, 7  ;;  %vm373_vm5 = vcmask 1044484   ;;  %vm375_vm6 = vcmask 1045509   ;;  %vm377_vm7 = vcmask 1046534   ;;  %s481_s0 = smov [#allocation5]  }
  0x11   :  { %vm379_vm8 = vcmask 1047559   ;;  %vm390_vm9 = vcmask 261120   ;;  %s398_s1 = sshll.u32 %s481_s0, 4  ;;  %s399_s1 = int_to_ptr.vmem [resolvable:$true] %s398_s1 }
  0x12   :  { %v119_v46 = vsub.s32 1, %v111_v45  ;;  %v112_v47 = vsub.s32 0, %v111_v45  ;;  %v126_v52 = vsub.s32 2, %v111_v45  ;;  %v133_v57 = vsub.s32 3, %v111_v45  ;;  %s453_s2 = scalar_lea.vmem %s399_s1, 256  ;;  %p458_p6 = scmp.lt.s32.totalorder %s399_s1, %s399_s1 }
  0x13   :  { %55 = vrot.lane.b32.xlu1 %v50_v2, %s480_s23  ;;  %v140_v60 = vsub.s32 4, %v111_v45  ;;  %v147_v63 = vsub.s32 5, %v111_v45  ;;  %p454_p5 = scmp.ne.s32.totalorder %s399_s1, %s453_s2  ;;  %p459_p7 = scmp.lt.s32.totalorder %s453_s2, %s453_s2 }
  0x14   :  { %35 = vrot.lane.b32.xlu0 %v30_v3, %s480_s23 }
  0x15   :  { %p460_p8 = por %p459_p7, %p458_p6 }
  0x17   :  { %p461_p9 = pnand %p460_p8, %p454_p5 }
  0x81   :  { %v54_v4 = vpop.permute.xlu1 %53 }
  0x82   :  { %v34_v5 = vpop.permute.xlu0 %33  ;;  %v59_v6 = vsub.f32 %v49_v0, %v54_v4 }
  0x83   :  { %v39_v7 = vsub.f32 %v29_v1, %v34_v5  ;;  %v161_v5 = vsub.s32 7, %v111_v45 }
  0x84   :  { %v61_v8 = vmul.f32 0.5, %v59_v6 }
  0x85   :  { %v41_v9 = vmul.f32 0.5, %v39_v7  ;;  %v56_v10 = vpop.permute.xlu1 %55 }
  0x86   :  { %v36_v11 = vpop.permute.xlu0 %35  ;;  %417 = vtanh.f32 %v61_v8  ;;  %v60_v12 = vsub.f32 %v50_v2, %v56_v10  ;;  %v154_v2 = vsub.s32 6, %v111_v45  ;;  %v94_v10 = vld [vmem:[#allocation2] sm:$0xf] }
  0x87   :  { %v40_v13 = vsub.f32 %v30_v3, %v36_v11  ;;  %419 = vtanh.f32 %v41_v9  ;;  %v95_v11 = vld [vmem:[#allocation2 + $0x4] sm:$0xf] }
  0x88   :  { %v62_v14 = vmul.f32 0.5, %v60_v12 }
  0x89   :  { %v42_v15 = vmul.f32 0.5, %v40_v13 }
  0x8a   :  { %421 = vtanh.f32 %v62_v14 }
  0x8b   :  { %423 = vtanh.f32 %v42_v15 }
  0x93   :  { %v418_v16 = vpop.eup %417 }
  0x94   :  { %v420_v17 = vpop.eup %419  ;;  %v65_v18 = vadd.f32 1.0, %v418_v16  ;;  %v102_v16 = vld [vmem:[#allocation2 + $0x20] sm:$0xf] }
  0x95   :  { %v45_v19 = vadd.f32 1.0, %v420_v17  ;;  %v96_v17 = vld [vmem:[#allocation2 + $0x8] sm:$0xf] }
  0x96   :  { %v67_v20 = vmul.f32 0.5, %v65_v18 }
  0x97   :  { %v422_v21 = vpop.eup %421  ;;  %v47_v22 = vmul.f32 0.5, %v45_v19 }
  0x98   :  { %v424_v23 = vpop.eup %423  ;;  %v66_v24 = vadd.f32 1.0, %v422_v21 }
  0x99   :  { %v69_v25 = vmul.f32 %v67_v20, %v47_v22  ;;  %v46_v26 = vadd.f32 1.0, %v424_v23 }
  0x9a   :  { %v68_v27 = vmul.f32 0.5, %v66_v24 }
  0x9b   :  { %v72_v28 = vsel %vm71_vm0, %v69_v25, -inf  ;;  %v48_v29 = vmul.f32 0.5, %v46_v26 }
  0x9c   :  { %73 = vmax.xlane.f32.xlu0 %v72_v28  ;;  %v103_v28 = vld [vmem:[#allocation2 + $0x24] sm:$0xf] }
  0x9d   :  { %v70_v30 = vmul.f32 %v68_v27, %v48_v29  ;;  %v97_v29 = vld [vmem:[#allocation2 + $0xc] sm:$0xf] }
  0x9f   :  { %v75_v31 = vsel %vm71_vm0, %v70_v30, -inf }
  0xa0   :  { %76 = vmax.xlane.f32.xlu1 %v75_v31 }
 0x125   :  { %v74_v32 = vpop.xlane.xlu0 %73 }
 0x126   :  { %v78_v33 = vsub.f32 %v69_v25, %v74_v32 }
 0x128   :  { %v80_v34 = vmul.f32 1.442695, %v78_v33 }
 0x129   :  { %v77_v35 = vpop.xlane.xlu1 %76 }
 0x12a   :  { %425 = vpow2.f32 %v80_v34  ;;  %v79_v36 = vsub.f32 %v70_v30, %v77_v35 }
 0x12c   :  { %v82_v37 = vmul.f32 1.442695, %v79_v36 }
 0x12e   :  { %427 = vpow2.f32 %v82_v37 }
 0x137   :  { %v426_v38 = vpop.eup %425 }
 0x138   :  { %v84_v39 = vsel %vm71_vm0, %v426_v38, 0.0 }
 0x139   :  { %85 = vadd.xlane.f32.xlu0 %v84_v39 }
 0x13b   :  { %v428_v40 = vpop.eup %427 }
 0x13c   :  { %v87_v41 = vsel %vm71_vm0, %v428_v40, 0.0 }
 0x13d   :  { %88 = vadd.xlane.f32.xlu0 %v87_v41  ;;  %v98_v41 = vld [vmem:[#allocation2 + $0x10] sm:$0xf] }
 0x1c2   :  { %v86_v42 = vpop.xlane.xlu0 %85 }
 0x1c3   :  { %429 = vrcp.f32 %v86_v42 }
 0x1c6   :  { %v89_v43 = vpop.xlane.xlu0 %88 }
 0x1c7   :  { %431 = vrcp.f32 %v89_v43 }
 0x1d0   :  { %v430_v48 = vpop.eup %429 }
 0x1d1   :  { %v92_v49 = vmul.f32 %v430_v48, %v426_v38 }
 0x1d3   :  { %v120_v50 = vrot.slane %v92_v49, %v119_v46  ;;  %v113_v51 = vrot.slane %v92_v49, %v112_v47  ;;  %v127_v55 = vrot.slane %v92_v49, %v126_v52  ;;  %v134_v58 = vrot.slane %v92_v49, %v133_v57 }
 0x1d4   :  { %v432_v53 = vpop.eup %431  ;;  %v141_v61 = vrot.slane %v92_v49, %v140_v60  ;;  %v148_v0 = vrot.slane %v92_v49, %v147_v63  ;;  %v155_v3 = vrot.slane %v92_v49, %v154_v2  ;;  %v162_v6 = vrot.slane %v92_v49, %v161_v5 }
 0x1d5   :  { %v93_v54 = vmul.f32 %v432_v53, %v428_v40  ;;  %122 = vbcast.lane.b32.xlu0 %v120_v50, 256  ;;  %115 = vbcast.lane.b32.xlu1 %v113_v51, 256  ;;  %v104_v40 = vld [vmem:[#allocation2 + $0x28] sm:$0xf]  ;;  %v105_v53 = vld [vmem:[#allocation2 + $0x2c] sm:$0xf] }
 0x1d7   :  { %v169_v56 = vrot.slane %v93_v54, %v112_v47  ;;  %v176_v59 = vrot.slane %v93_v54, %v119_v46  ;;  %v183_v62 = vrot.slane %v93_v54, %v126_v52  ;;  %v190_v1 = vrot.slane %v93_v54, %v133_v57 }
 0x1d8   :  { %v197_v4 = vrot.slane %v93_v54, %v140_v60  ;;  %v204_v7 = vrot.slane %v93_v54, %v147_v63  ;;  %v211_v8 = vrot.slane %v93_v54, %v154_v2  ;;  %v218_v9 = vrot.slane %v93_v54, %v161_v5 }
 0x1d9   :  { %129 = vbcast.lane.b32.xlu0 %v127_v55, 256  ;;  %171 = vbcast.lane.b32.xlu1 %v169_v56, 256  ;;  %v99_v56 = vld [vmem:[#allocation2 + $0x14] sm:$0xf] }
 0x1dd   :  { %136 = vbcast.lane.b32.xlu0 %v134_v58, 256  ;;  %178 = vbcast.lane.b32.xlu1 %v176_v59, 256 }
 0x1e1   :  { %143 = vbcast.lane.b32.xlu0 %v141_v61, 256  ;;  %185 = vbcast.lane.b32.xlu1 %v183_v62, 256 }
 0x1e5   :  { %150 = vbcast.lane.b32.xlu0 %v148_v0, 256  ;;  %192 = vbcast.lane.b32.xlu1 %v190_v1, 256 }
 0x1e9   :  { %157 = vbcast.lane.b32.xlu0 %v155_v3, 256  ;;  %199 = vbcast.lane.b32.xlu1 %v197_v4, 256 }
 0x1ed   :  { %164 = vbcast.lane.b32.xlu0 %v162_v6, 256  ;;  %206 = vbcast.lane.b32.xlu1 %v204_v7, 256  ;;  %v106_v7 = vld [vmem:[#allocation2 + $0x30] sm:$0xf] }
 0x1f1   :  { %213 = vbcast.lane.b32.xlu1 %v211_v8, 256  ;;  %v100_v8 = vld [vmem:[#allocation2 + $0x18] sm:$0xf] }
 0x1f5   :  { %220 = vbcast.lane.b32.xlu1 %v218_v9, 256 }
 0x247   :  { %v116_v12 = vpop.permute.xlu1 %115  ;;  %v123_v13 = vpop.permute.xlu0 %122 }
 0x248   :  { %v222_v14 = vmul.f32 %v116_v12, %v94_v10  ;;  %v223_v15 = vmul.f32 %v123_v13, %v95_v11 }
 0x24a   :  { %v239_v18 = vsel %vm238_vm1, %v222_v14, 0.0  ;;  %v246_v19 = vsel %vm238_vm1, %v223_v15, 0.0 }
 0x24b   :  { %v240_v20 = vrot.slane %v239_v18, 4  ;;  %v247_v21 = vrot.slane %v246_v19, 4  ;;  %v172_v22 = vpop.permute.xlu1 %171  ;;  %v130_v23 = vpop.permute.xlu0 %129 }
 0x24c   :  { %v230_v24 = vmul.f32 %v172_v22, %v102_v16  ;;  %v224_v25 = vmul.f32 %v130_v23, %v96_v17 }
 0x24d   :  { %v241_v26 = vadd.f32 %v240_v20, %v239_v18  ;;  %v248_v27 = vadd.f32 %v247_v21, %v246_v19 }
 0x24e   :  { %v295_v30 = vsel %vm238_vm1, %v230_v24, 0.0  ;;  %v253_v31 = vsel %vm238_vm1, %v224_v25, 0.0  ;;  %v107_v25 = vld [vmem:[#allocation2 + $0x34] sm:$0xf] }
 0x24f   :  { %v242_v32 = vrot.slane %v241_v26, 2  ;;  %v179_v33 = vpop.permute.xlu1 %178  ;;  %v137_v34 = vpop.permute.xlu0 %136  ;;  %v249_v35 = vrot.slane %v248_v27, 2  ;;  %v254_v36 = vrot.slane %v253_v31, 4  ;;  %v296_v39 = vrot.slane %v295_v30, 4 }
 0x250   :  { %v231_v37 = vmul.f32 %v179_v33, %v103_v28  ;;  %v225_v38 = vmul.f32 %v137_v34, %v97_v29 }
 0x251   :  { %v243_v43 = vadd.f32 %v242_v32, %v241_v26  ;;  %v250_v47 = vadd.f32 %v249_v35, %v248_v27  ;;  %v255_v48 = vadd.f32 %v254_v36, %v253_v31  ;;  %v297_v51 = vadd.f32 %v296_v39, %v295_v30  ;;  %v101_v31 = vld [vmem:[#allocation2 + $0x1c] sm:$0xf] }
 0x252   :  { %v302_v42 = vsel %vm238_vm1, %v231_v37, 0.0  ;;  %v260_v44 = vsel %vm238_vm1, %v225_v38, 0.0 }
 0x253   :  { %v186_v45 = vpop.permute.xlu1 %185  ;;  %v144_v46 = vpop.permute.xlu0 %143  ;;  %v303_v52 = vrot.slane %v302_v42, 4  ;;  %v261_v54 = vrot.slane %v260_v44, 4  ;;  %v244_v57 = vrot.slane %v243_v43, 1  ;;  %v251_v61 = vrot.slane %v250_v47, 1 }
 0x254   :  { %v232_v49 = vmul.f32 %v186_v45, %v104_v40  ;;  %v226_v50 = vmul.f32 %v144_v46, %v98_v41  ;;  %v256_v62 = vrot.slane %v255_v48, 2  ;;  %v298_v1 = vrot.slane %v297_v51, 2 }
 0x255   :  { %v304_v2 = vadd.f32 %v303_v52, %v302_v42  ;;  %v262_v4 = vadd.f32 %v261_v54, %v260_v44  ;;  %v245_v14 = vadd.f32 %v244_v57, %v243_v43  ;;  %v252_v15 = vadd.f32 %v251_v61, %v250_v47 }
 0x256   :  { %v267_v55 = vsel %vm238_vm1, %v226_v50, 0.0  ;;  %v309_v58 = vsel %vm238_vm1, %v232_v49, 0.0  ;;  %v257_v16 = vadd.f32 %v256_v62, %v255_v48  ;;  %v533_v18 = vadd.f32 %v298_v1, %v297_v51  ;;  %v108_v48 = vld [vmem:[#allocation2 + $0x38] sm:$0xf] }
 0x257   :  { %v193_v59 = vpop.permute.xlu1 %192  ;;  %v151_v60 = vpop.permute.xlu0 %150  ;;  %v268_v63 = vrot.slane %v267_v55, 4  ;;  %v310_v5 = vrot.slane %v309_v58, 4  ;;  %v305_v19 = vrot.slane %v304_v2, 2  ;;  %v263_v22 = vrot.slane %v262_v4, 2 }
 0x258   :  { %v233_v0 = vmul.f32 %v193_v59, %v105_v53  ;;  %v227_v3 = vmul.f32 %v151_v60, %v99_v56  ;;  %v368_v33 = vsel %vm367_vm2, %v252_v15, %v245_v14  ;;  %v258_v34 = vrot.slane %v257_v16, 1 }
 0x259   :  { %v269_v9 = vadd.f32 %v268_v63, %v267_v55  ;;  %v311_v23 = vadd.f32 %v310_v5, %v309_v58  ;;  %v300_v36 = vrot.slane %v533_v18, 1  ;;  %v306_v37 = vadd.f32 %v305_v19, %v304_v2  ;;  %v109_v58 = vld [vmem:[#allocation2 + $0x3c] sm:$0xf] }
 0x25a   :  { %v316_v6 = vsel %vm238_vm1, %v233_v0, 0.0  ;;  %v274_v11 = vsel %vm238_vm1, %v227_v3, 0.0  ;;  %v264_v40 = vadd.f32 %v263_v22, %v262_v4  ;;  %v259_v50 = vadd.f32 %v258_v34, %v257_v16 }
 0x25b   :  { %v317_v10 = vrot.slane %v316_v6, 4  ;;  %v200_v12 = vpop.permute.xlu1 %199  ;;  %v158_v13 = vpop.permute.xlu0 %157  ;;  %v275_v17 = vrot.slane %v274_v11, 4  ;;  %v270_v26 = vrot.slane %v269_v9, 2  ;;  %v312_v41 = vrot.slane %v311_v23, 2 }
 0x25c   :  { %v234_v20 = vmul.f32 %v200_v12, %v106_v7  ;;  %v228_v21 = vmul.f32 %v158_v13, %v100_v8  ;;  %v307_v54 = vrot.slane %v306_v37, 1  ;;  %v265_v59 = vrot.slane %v264_v40, 1 }
 0x25d   :  { %v276_v24 = vadd.f32 %v275_v17, %v274_v11  ;;  %v318_v27 = vadd.f32 %v317_v10, %v316_v6  ;;  %v271_v44 = vadd.f32 %v270_v26, %v269_v9  ;;  %v313_v60 = vadd.f32 %v312_v41, %v311_v23 }
 0x25e   :  { %v323_v28 = vsel %vm238_vm1, %v234_v20, 0.0  ;;  %v281_v29 = vsel %vm238_vm1, %v228_v21, 0.0  ;;  %v370_v12 = vsel %vm369_vm3, %v259_v50, %v368_v33  ;;  %v266_v13 = vadd.f32 %v265_v59, %v264_v40 }
 0x25f   :  { %v207_v30 = vpop.permute.xlu1 %206  ;;  %v165_v32 = vpop.permute.xlu0 %164  ;;  %v277_v35 = vrot.slane %v276_v24, 2  ;;  %v324_v38 = vrot.slane %v323_v28, 4  ;;  %v282_v39 = vrot.slane %v281_v29, 4  ;;  %v319_v45 = vrot.slane %v318_v27, 2 }
 0x260   :  { %v235_v42 = vmul.f32 %v207_v30, %v107_v25  ;;  %v229_v43 = vmul.f32 %v165_v32, %v101_v31  ;;  %v272_v63 = vrot.slane %v271_v44, 1  ;;  %v314_v16 = vrot.slane %v313_v60, 1 }
 0x261   :  { %v325_v46 = vadd.f32 %v324_v38, %v323_v28  ;;  %v283_v47 = vadd.f32 %v282_v39, %v281_v29  ;;  %v278_v51 = vadd.f32 %v277_v35, %v276_v24  ;;  %v320_v0 = vadd.f32 %v319_v45, %v318_v27 }
 0x262   :  { %v330_v52 = vsel %vm238_vm1, %v235_v42, 0.0  ;;  %v288_v53 = vsel %vm238_vm1, %v229_v43, 0.0  ;;  %v273_v17 = vadd.f32 %v272_v63, %v271_v44  ;;  %v308_v25 = vadd.f32 %v307_v54, %v306_v37 }
 0x263   :  { %v214_v49 = vpop.permute.xlu1 %213  ;;  %v326_v55 = vrot.slane %v325_v46, 2  ;;  %v284_v56 = vrot.slane %v283_v47, 2  ;;  %v331_v57 = vrot.slane %v330_v52, 4  ;;  %v289_v61 = vrot.slane %v288_v53, 4 }
 0x264   :  { %v236_v62 = vmul.f32 %v214_v49, %v108_v48  ;;  %v279_v4 = vrot.slane %v278_v51, 1  ;;  %v321_v21 = vrot.slane %v320_v0, 1  ;;  %v372_v29 = vsel %vm371_vm4, %v266_v13, %v370_v12 }
 0x265   :  { %v285_v1 = vadd.f32 %v284_v56, %v283_v47  ;;  %v332_v2 = vadd.f32 %v331_v57, %v330_v52  ;;  %v290_v5 = vadd.f32 %v289_v61, %v288_v53  ;;  %v327_v8 = vadd.f32 %v326_v55, %v325_v46 }
 0x266   :  { %v337_v6 = vsel %vm238_vm1, %v236_v62, 0.0  ;;  %v280_v22 = vadd.f32 %v279_v4, %v278_v51  ;;  %v301_v33 = vadd.f32 %v300_v36, %v533_v18  ;;  %v315_v34 = vadd.f32 %v314_v16, %v313_v60 }
 0x267   :  { %v221_v3 = vpop.permute.xlu1 %220  ;;  %v286_v9 = vrot.slane %v285_v1, 1  ;;  %v333_v10 = vrot.slane %v332_v2, 2  ;;  %v338_v11 = vrot.slane %v337_v6, 4  ;;  %v291_v14 = vrot.slane %v290_v5, 2 }
 0x268   :  { %v237_v7 = vmul.f32 %v221_v3, %v109_v58  ;;  %v328_v26 = vrot.slane %v327_v8, 1  ;;  %v374_v35 = vsel %vm373_vm5, %v273_v17, %v372_v29  ;;  %v322_v39 = vadd.f32 %v321_v21, %v320_v0 }
 0x269   :  { %v334_v19 = vadd.f32 %v333_v10, %v332_v2  ;;  %v339_v20 = vadd.f32 %v338_v11, %v337_v6  ;;  %v292_v23 = vadd.f32 %v291_v14, %v290_v5  ;;  %v287_v27 = vadd.f32 %v286_v9, %v285_v1 }
 0x26a   :  { %v344_v15 = vsel %vm238_vm1, %v237_v7, 0.0  ;;  %v376_v40 = vsel %vm375_vm6, %v280_v22, %v374_v35  ;;  %v329_v42 = vadd.f32 %v328_v26, %v327_v8  ;;  %v381_v45 = vsel %vm367_vm2, %v308_v25, %v301_v33 }
 0x26b   :  { %v345_v24 = vrot.slane %v344_v15, 4  ;;  %v340_v28 = vrot.slane %v339_v20, 2  ;;  %v335_v30 = vrot.slane %v334_v19, 1  ;;  %v293_v31 = vrot.slane %v292_v23, 1 }
 0x26c   :  { %v378_v43 = vsel %vm377_vm7, %v287_v27, %v376_v40  ;;  %v382_v18 = vsel %vm369_vm3, %v315_v34, %v381_v45 }
 0x26d   :  { %v346_v32 = vadd.f32 %v345_v24, %v344_v15  ;;  %v341_v38 = vadd.f32 %v340_v28, %v339_v20  ;;  %v294_v37 = vadd.f32 %v293_v31, %v292_v23  ;;  %v336_v46 = vadd.f32 %v335_v30, %v334_v19 }
 0x26e   :  { %v383_v49 = vsel %vm371_vm4, %v322_v39, %v382_v18 }
 0x26f   :  { %v347_v41 = vrot.slane %v346_v32, 2  ;;  %v342_v44 = vrot.slane %v341_v38, 1  ;;  %v380_v48 = vsel %vm379_vm8, %v294_v37, %v378_v43  ;;  %v384_v51 = vsel %vm373_vm5, %v329_v42, %v383_v49 }
 0x270   :  { %391 = vst.msk [vmem:[#allocation5] sm:$0xff] %vm390_vm9, %v380_v48  ;;  %v385_v52 = vsel %vm375_vm6, %v336_v46, %v384_v51 }
 0x271   :  { %v348_v47 = vadd.f32 %v347_v41, %v346_v32  ;;  %v343_v36 = vadd.f32 %v342_v44, %v341_v38 }
 0x273   :  { %v349_v50 = vrot.slane %v348_v47, 1  ;;  %v386_v54 = vsel %vm377_vm7, %v343_v36, %v385_v52 }
 0x275   :  { %v350_v53 = vadd.f32 %v349_v50, %v348_v47 }
 0x277   :  { %v387_v55 = vsel %vm379_vm8, %v350_v53, %v386_v54 }
 0x278   :  { %392 = vst.msk [vmem:[#allocation5 + $0x8] sm:$0xff] %vm390_vm9, %v387_v55 }
 0x279   :  { %464 = shalt.err (!%p461_p9)
}
 0x27a   :  { %s482_s28 = smov 128   ;;  %s483_s29 = smov 8  }
 0x27b   :  { %404 = dma.vmem_to_hbm [thread:$0]  %s399_s1, 256, %s567_s3, [#allocation4], %s482_s28, %s482_s28, %s483_s29  }
 0x27c   :  { %475 = dma.done.wait [#allocation4], 256  }
 0x27d   :  { %476 = vsyncadd [#allocation4], 4294967040 }
 0x27e   :  { %408 = vsyncpa [#allocation3], 1 }
 0x27f   :  { %409 = vsyncpa [#allocation4], 1 }

</bundles_post_ra>
